<compile_context>
chip_gen: v7x
topology: tpu7x:2x2x1
jax: 0.10.0
libtpu: 0.0.40
codegen_flags: <defaults>
</compile_context>

<pallas_src>
import functools

import jax
import jax.numpy as jnp
from jax.experimental import pallas as pl
from jax.experimental.pallas import tpu as pltpu


def _round_up(x, m):
    return ((x + m - 1) // m) * m


def _disc_kernel(alpha_ref, z_ref, w1_ref, b1_ref, w2_ref, ymid_ref, ypad_ref):
    # alpha is a single PReLU parameter living in SMEM (scalar path, no DMA tile).
    a = alpha_ref[0]

    # fc1: bf16 x bf16 MXU matmul, f32 accumulation, + bias, PReLU.
    h = jnp.dot(z_ref[...], w1_ref[...], preferred_element_type=jnp.float32)
    h = h + b1_ref[...]                       # b1 is (1, H), broadcasts over rows
    h = jnp.where(h > 0.0, h, a * h)
    ymid_ref[...] = h.astype(ymid_ref.dtype)

    # fc2 (no bias): lane-dense padded output (TB, 128); real logits live in [:, :2].
    ypad_ref[...] = jnp.dot(h.astype(w2_ref.dtype), w2_ref[...],
                            preferred_element_type=jnp.float32).astype(ypad_ref.dtype)


@functools.partial(jax.jit, static_argnames=("block_b",))
def discriminator_forward(z, w1, b1, alpha, w2, *, block_b=512):
    """z: (B, Z1, Z2) f32. Returns (y_mid (B, F//2) f32, y (B, 2) f32)."""
    B = z.shape[0]
    Fdim = z.shape[1] * z.shape[2]
    H = w1.shape[1]
    NOUT = w2.shape[1]            # 2
    NPAD = 128                    # lane-dense output width for fc2

    # Batch tile: sublane-aligned (multiple of 8), capped at block_b.
    TB = int(min(block_b, _round_up(B, 8)))
    TB = _round_up(TB, 8)
    B_pad = _round_up(B, TB)
    grid = (B_pad // TB,)

    # Flatten + pad batch with zero rows so every block is full.
    z_flat = z.reshape(B, Fdim)
    if B_pad != B:
        z_flat = jnp.pad(z_flat, ((0, B_pad - B), (0, 0)))

    # bf16 matmul operands (f32 accumulation happens inside the kernel).
    z_bf = z_flat.astype(jnp.bfloat16)
    w1_bf = w1.astype(jnp.bfloat16)
    w2_pad = jnp.zeros((H, NPAD), jnp.float32).at[:, :NOUT].set(w2)
    w2_bf = w2_pad.astype(jnp.bfloat16)
    b1_2d = b1.reshape(1, H).astype(jnp.float32)
    alpha_s = jnp.asarray(alpha, jnp.float32).reshape(1)

    y_mid_pad, y_pad = pl.pallas_call(
        _disc_kernel,
        grid=grid,
        out_shape=(
            jax.ShapeDtypeStruct((B_pad, H), jnp.float32),
            jax.ShapeDtypeStruct((B_pad, NPAD), jnp.float32),
        ),
        in_specs=[
            pl.BlockSpec(memory_space=pltpu.MemorySpace.SMEM),    # alpha (scalar)
            pl.BlockSpec((TB, Fdim), lambda i: (i, 0)),           # z tile (streamed)
            pl.BlockSpec((Fdim, H), lambda i: (0, 0)),            # w1 (resident)
            pl.BlockSpec((1, H), lambda i: (0, 0)),               # b1 (resident)
            pl.BlockSpec((H, NPAD), lambda i: (0, 0)),            # w2 padded (resident)
        ],
        out_specs=(
            pl.BlockSpec((TB, H), lambda i: (i, 0)),              # y_mid tile
            pl.BlockSpec((TB, NPAD), lambda i: (i, 0)),           # y padded tile
        ),
        compiler_params=pltpu.CompilerParams(
            dimension_semantics=("parallel",),                    # megacore on v7x
        ),
    )(alpha_s, z_bf, w1_bf, b1_2d, w2_bf)

    return y_mid_pad[:B], y_pad[:B, :NOUT]


def _reference_f32(z, w1, b1, alpha, w2):
    zf = z.reshape(z.shape[0], -1)
    h = zf @ w1 + b1
    h = jnp.where(h > 0, h, alpha * h)
    return h, h @ w2


def _reference_bf16(z, w1, b1, alpha, w2):
    # Mirrors the kernel's bf16 operand rounding (f32 accumulation).
    f32 = jnp.float32
    zf = z.reshape(z.shape[0], -1).astype(jnp.bfloat16).astype(f32)
    w1r = w1.astype(jnp.bfloat16).astype(f32)
    w2r = w2.astype(jnp.bfloat16).astype(f32)
    h = zf @ w1r + b1
    h = jnp.where(h > 0, h, alpha * h)
    y = h.astype(jnp.bfloat16).astype(f32) @ w2r
    return h, y


if __name__ == "__main__":
    # z_shape = (B, 8, 32)  -> flatten_size F = 256, hidden H = 128
    B, Z1, Z2 = 2, 8, 32
    F = Z1 * Z2
    H = F // 2

    key = jax.random.PRNGKey(0)
    k_z, k_w1, k_b1, k_w2, k_z2 = jax.random.split(key, 5)

    z = jax.random.normal(k_z, (B, Z1, Z2), dtype=jnp.float32)
    # Deterministic synthetic weights (Kaiming-ish scale).
    w1 = jax.random.normal(k_w1, (F, H), dtype=jnp.float32) * (1.0 / jnp.sqrt(F))
    b1 = jax.random.normal(k_b1, (H,), dtype=jnp.float32) * 0.01
    w2 = jax.random.normal(k_w2, (H, 2), dtype=jnp.float32) * (1.0 / jnp.sqrt(H))
    alpha = jnp.float32(0.25)  # nn.PReLU() default init

    # --- small-batch path (B=2, single grid step) ---------------------------
    y_mid, y = discriminator_forward(z, w1, b1, alpha, w2)
    jax.block_until_ready((y_mid, y))
    assert y_mid.shape == (B, H) and y.shape == (B, 2)

    ref_mid_bf, ref_y_bf = _reference_bf16(z, w1, b1, alpha, w2)
    assert jnp.allclose(y_mid, ref_mid_bf, atol=1e-2, rtol=1e-2)
    assert jnp.allclose(y, ref_y_bf, atol=1e-2, rtol=1e-2)

    ref_mid, ref_y = _reference_f32(z, w1, b1, alpha, w2)
    assert jnp.allclose(y_mid, ref_mid, atol=5e-2, rtol=5e-2)
    assert jnp.allclose(y, ref_y, atol=5e-2, rtol=5e-2)

    # --- gridded path (padding + multiple batch tiles) -----------------------
    B2 = 200
    z_big = jax.random.normal(k_z2, (B2, Z1, Z2), dtype=jnp.float32)
    y_mid2, y2 = discriminator_forward(z_big, w1, b1, alpha, w2, block_b=64)
    jax.block_until_ready((y_mid2, y2))
    assert y_mid2.shape == (B2, H) and y2.shape == (B2, 2)

    ref_mid2, ref_y2 = _reference_bf16(z_big, w1, b1, alpha, w2)
    assert jnp.allclose(y_mid2, ref_mid2, atol=1e-2, rtol=1e-2)
    assert jnp.allclose(y2, ref_y2, atol=1e-2, rtol=1e-2)

    print("KERNEL_OK")
</pallas_src>

<mosaic_0001>
module attributes {stable_mosaic.version = 11 : i64} {
  func.func @_disc_kernel(%arg0: i32, %arg1: memref<1xf32, #tpu.memory_space<smem>>, %arg2: memref<8x256xbf16, #tpu.memory_space<vmem>>, %arg3: memref<256x128xbf16, #tpu.memory_space<vmem>>, %arg4: memref<1x128xf32, #tpu.memory_space<vmem>>, %arg5: memref<128x128xbf16, #tpu.memory_space<vmem>>, %arg6: memref<8x128xf32, #tpu.memory_space<vmem>>, %arg7: memref<8x128xf32, #tpu.memory_space<vmem>>) attributes {dimension_semantics = [#tpu.dimension_semantics<parallel>], iteration_bounds = array<i64: 1>, scalar_prefetch = 0 : i64, scratch_operands = 0 : i64, tpu.core_type = #tpu.core_type<tc>, window_params = [{transform_indices = @transform_0, window_bounds = array<i64: 1>}, {transform_indices = @transform_1, window_bounds = array<i64: 8, 256>}, {pipeline_mode = #tpu.pipeline_mode<synchronous>, transform_indices = @transform_2, window_bounds = array<i64: 256, 128>}, {pipeline_mode = #tpu.pipeline_mode<synchronous>, transform_indices = @transform_3, window_bounds = array<i64: 1, 128>}, {pipeline_mode = #tpu.pipeline_mode<synchronous>, transform_indices = @transform_4, window_bounds = array<i64: 128, 128>}, {transform_indices = @transform_5, window_bounds = array<i64: 8, 128>}, {transform_indices = @transform_6, window_bounds = array<i64: 8, 128>}]} {
    %c0 = arith.constant 0 : index
    %0 = memref.load %arg1[%c0] : memref<1xf32, #tpu.memory_space<smem>>
    %c0_0 = arith.constant 0 : index
    %c0_1 = arith.constant 0 : index
    %1 = vector.load %arg2[%c0_0, %c0_1] : memref<8x256xbf16, #tpu.memory_space<vmem>>, vector<8x256xbf16>
    %c0_2 = arith.constant 0 : index
    %c0_3 = arith.constant 0 : index
    %2 = vector.load %arg3[%c0_2, %c0_3] : memref<256x128xbf16, #tpu.memory_space<vmem>>, vector<256x128xbf16>
    %cst = arith.constant dense<0.000000e+00> : vector<8x128xf32>
    %3 = tpu.matmul %1, %2, %cst {dimension_numbers = #tpu.dot_dimension_numbers<[1], [0], [0], [1], [0, 0, 1, 1], [], []>} : vector<8x256xbf16>, vector<256x128xbf16>, vector<8x128xf32> -> vector<8x128xf32>
    %c0_4 = arith.constant 0 : index
    %c0_5 = arith.constant 0 : index
    %4 = vector.load %arg4[%c0_4, %c0_5] : memref<1x128xf32, #tpu.memory_space<vmem>>, vector<1x128xf32>
    %5 = vector.broadcast %4 : vector<1x128xf32> to vector<8x128xf32>
    %6 = arith.addf %3, %5 : vector<8x128xf32>
    %cst_6 = arith.constant 0.000000e+00 : f32
    %7 = vector.broadcast %cst_6 : f32 to vector<8x128xf32>
    %8 = arith.cmpf ogt, %6, %7 : vector<8x128xf32>
    %9 = vector.broadcast %0 : f32 to vector<8x128xf32>
    %10 = arith.mulf %9, %6 : vector<8x128xf32>
    %11 = arith.select %8, %6, %10 : vector<8x128xi1>, vector<8x128xf32>
    %c0_7 = arith.constant 0 : index
    %c0_8 = arith.constant 0 : index
    %12 = vector.load %arg6[%c0_7, %c0_8] : memref<8x128xf32, #tpu.memory_space<vmem>>, vector<8x128xf32>
    tpu.vector_store %arg6[%c0_7, %c0_8], %11 {strides = array<i32>} : memref<8x128xf32, #tpu.memory_space<vmem>>, vector<8x128xf32>,
    %13 = arith.truncf %11 : vector<8x128xf32> to vector<8x128xbf16>
    %c0_9 = arith.constant 0 : index
    %c0_10 = arith.constant 0 : index
    %14 = vector.load %arg5[%c0_9, %c0_10] : memref<128x128xbf16, #tpu.memory_space<vmem>>, vector<128x128xbf16>
    %cst_11 = arith.constant dense<0.000000e+00> : vector<8x128xf32>
    %15 = tpu.matmul %13, %14, %cst_11 {dimension_numbers = #tpu.dot_dimension_numbers<[1], [0], [0], [1], [0, 0, 1, 1], [], []>} : vector<8x128xbf16>, vector<128x128xbf16>, vector<8x128xf32> -> vector<8x128xf32>
    %c0_12 = arith.constant 0 : index
    %c0_13 = arith.constant 0 : index
    %16 = vector.load %arg7[%c0_12, %c0_13] : memref<8x128xf32, #tpu.memory_space<vmem>>, vector<8x128xf32>
    tpu.vector_store %arg7[%c0_12, %c0_13], %15 {strides = array<i32>} : memref<8x128xf32, #tpu.memory_space<vmem>>, vector<8x128xf32>,
    return
  }
  func.func @transform_0(%arg0: i32) -> i32 {
    %c0_i32 = arith.constant 0 : i32
    %c0_i32_0 = arith.constant 0 : i32
    return %c0_i32 : i32
  }
  func.func @transform_1(%arg0: i32) -> (i32, i32) {
    %c0_i32 = arith.constant 0 : i32
    %c0_i32_0 = arith.constant 0 : i32
    return %arg0, %c0_i32 : i32, i32
  }
  func.func @transform_2(%arg0: i32) -> (i32, i32) {
    %c0_i32 = arith.constant 0 : i32
    %c0_i32_0 = arith.constant 0 : i32
    %c0_i32_1 = arith.constant 0 : i32
    return %c0_i32, %c0_i32_0 : i32, i32
  }
  func.func @transform_3(%arg0: i32) -> (i32, i32) {
    %c0_i32 = arith.constant 0 : i32
    %c0_i32_0 = arith.constant 0 : i32
    %c0_i32_1 = arith.constant 0 : i32
    return %c0_i32, %c0_i32_0 : i32, i32
  }
  func.func @transform_4(%arg0: i32) -> (i32, i32) {
    %c0_i32 = arith.constant 0 : i32
    %c0_i32_0 = arith.constant 0 : i32
    %c0_i32_1 = arith.constant 0 : i32
    return %c0_i32, %c0_i32_0 : i32, i32
  }
  func.func @transform_5(%arg0: i32) -> (i32, i32) {
    %c0_i32 = arith.constant 0 : i32
    %c0_i32_0 = arith.constant 0 : i32
    return %arg0, %c0_i32 : i32, i32
  }
  func.func @transform_6(%arg0: i32) -> (i32, i32) {
    %c0_i32 = arith.constant 0 : i32
    %c0_i32_0 = arith.constant 0 : i32
    return %arg0, %c0_i32 : i32, i32
  }
}

</mosaic_0001>

<bundles_post_ra>
// kernel: discriminator_forward.1
= control target key start
LH: loop header
LB: loop body
LE: loop exit
PB: predicated region body
PF: predicated region fallthrough
CT: control target
= control target key end

     0   :  { %v433_v1 = vmov 0.0   ;;  %vm434_vm0 = vmmov 0   ;;  %s566_s2 = inlined_call_operand.vmem [shape: bf16[256,128], index: 2, kind: input, shape index: {}]   ;;  %s567_s1 = inlined_call_operand.vmem [shape: bf16[8,256], index: 1, kind: input, shape index: {}]   ;;  %s568_s4 = inlined_call_operand.vmem [shape: bf16[128,128], index: 4, kind: input, shape index: {}]   ;;  %s569_s3 = inlined_call_operand.vmem [shape: f32[1,128], index: 3, kind: input, shape index: {}]   ;;  %s570_s0 = inlined_call_operand.<no memory space> [shape: f32[1], index: 0, kind: input, shape index: {}]   ;;  %s571_s5 = inlined_call_operand.vmem [shape: f32[8,128], index: 5, kind: output, shape index: {0}]   ;;  %s572_s6 = inlined_call_operand.vmem [shape: f32[8,128], index: 6, kind: output, shape index: {1}]  }
   0x1   :  { %v407_v0 = vld [vmem:[%s566_s2 + $0x40] sm:$0xff]   ;;  %385 = vmatprep.subr.bf16.mxu1 %v433_v1  ;;  %v409_v3 = vld [vmem:[%s566_s2 + $0x48] sm:$0xff]   ;;  %v411_v5 = vld [vmem:[%s566_s2 + $0x50] sm:$0xff]   ;;  %401 = vmatprep.mubr.msk.bf16.mxu1 %vm434_vm0, %v433_v1  ;;  %v209_v33 = vstv %s570_s0 }
   0x2   :  { %v408_v2 = vld [vmem:[%s566_s2] sm:$0xff]   ;;  %354 = vmatprep.subr.bf16.mxu0 %v407_v0  ;;  %v410_v4 = vld [vmem:[%s566_s2 + $0x8] sm:$0xff]   ;;  %v412_v6 = vld [vmem:[%s566_s2 + $0x10] sm:$0xff]  }
   0x3   :  { %355 = vmatpush3.bf16.msra.mxu0 %v408_v2  ;;  %v413_v7 = vld [vmem:[%s566_s2 + $0x58] sm:$0xff]   ;;  %v415_v9 = vld [vmem:[%s566_s2 + $0x60] sm:$0xff]   ;;  %v417_v11 = vld [vmem:[%s566_s2 + $0x68] sm:$0xff]  }
   0x4   :  { %356 = vmatprep.subr.bf16.mxu0 %v409_v3  ;;  %v414_v8 = vld [vmem:[%s566_s2 + $0x18] sm:$0xff]   ;;  %v416_v10 = vld [vmem:[%s566_s2 + $0x20] sm:$0xff]   ;;  %v418_v15 = vld [vmem:[%s566_s2 + $0x28] sm:$0xff]  }
   0x5   :  { %v25_v12 = vld [vmem:[%s567_s1] sm:$0xff]  ;;  %v419_v16 = vld [vmem:[%s566_s2 + $0x70] sm:$0xff]   ;;  %v426_v17 = vld [vmem:[%s568_s4 + $0x8] sm:$0xff]  }
   0x6   :  { %v329_v13 = vcombine.high %v25_v12, %v25_v12  ;;  %v425_v14 = vld [vmem:[%s568_s4] sm:$0xff]   ;;  %v420_v18 = vld [vmem:[%s566_s2 + $0x30] sm:$0xff]   ;;  %v421_v19 = vld [vmem:[%s566_s2 + $0x78] sm:$0xff]   ;;  %v328_v23 = vcombine.low %v25_v12, %v25_v12 }
   0x7   :  { %357 = vmatpush3.bf16.msra.mxu0 %v410_v4  ;;  %386 = vmatpush3.bf16.msra.mxu1 %v425_v14  ;;  %v427_v20 = vld [vmem:[%s568_s4 + $0x10] sm:$0xff]   ;;  %v422_v21 = vld [vmem:[%s566_s2 + $0x38] sm:$0xff]   ;;  %v429_v24 = vld [vmem:[%s568_s4 + $0x20] sm:$0xff]  }
   0x8   :  { %358 = vmatprep.subr.bf16.mxu0 %v411_v5  ;;  %200 = vmatprep.mubr.bf16.mxu0 %v329_v13  ;;  %v428_v22 = vld [vmem:[%s568_s4 + $0x18] sm:$0xff]   ;;  %v430_v25 = vld [vmem:[%s568_s4 + $0x28] sm:$0xff]   ;;  %v431_v26 = vld [vmem:[%s568_s4 + $0x30] sm:$0xff]  }
   0x9   :  { %387 = vmatprep.subr.bf16.mxu1 %v433_v1  ;;  %v432_v27 = vld [vmem:[%s568_s4 + $0x38] sm:$0xff]   ;;  %v327_v29 = vld [vmem:[%s569_s3] ss:$0 sm:$0xff] }
   0xb   :  { %359 = vmatpush3.bf16.msra.mxu0 %v412_v6  ;;  %388 = vmatpush3.bf16.msra.mxu1 %v426_v17 }
   0xc   :  { %360 = vmatprep.subr.bf16.mxu0 %v413_v7  ;;  %389 = vmatprep.subr.bf16.mxu1 %v433_v1 }
   0xf   :  { %361 = vmatpush3.bf16.msra.mxu0 %v414_v8  ;;  %390 = vmatpush3.bf16.msra.mxu1 %v427_v20 }
  0x10   :  { %362 = vmatprep.subr.bf16.mxu0 %v415_v9  ;;  %391 = vmatprep.subr.bf16.mxu1 %v433_v1 }
  0x13   :  { %363 = vmatpush3.bf16.msra.mxu0 %v416_v10  ;;  %392 = vmatpush3.bf16.msra.mxu1 %v428_v22 }
  0x14   :  { %364 = vmatprep.subr.bf16.mxu0 %v417_v11  ;;  %393 = vmatprep.subr.bf16.mxu1 %v433_v1 }
  0x17   :  { %365 = vmatpush3.bf16.msra.mxu0 %v418_v15  ;;  %394 = vmatpush3.bf16.msra.mxu1 %v429_v24 }
  0x18   :  { %366 = vmatprep.subr.bf16.mxu0 %v419_v16  ;;  %395 = vmatprep.subr.bf16.mxu1 %v433_v1 }
  0x1b   :  { %367 = vmatpush3.bf16.msra.mxu0 %v420_v18  ;;  %396 = vmatpush3.bf16.msra.mxu1 %v430_v25 }
  0x1c   :  { %368 = vmatprep.subr.bf16.mxu0 %v421_v19  ;;  %397 = vmatprep.subr.bf16.mxu1 %v433_v1 }
  0x1f   :  { %369 = vmatpush3.bf16.msra.mxu0 %v422_v21  ;;  %398 = vmatpush3.bf16.msra.mxu1 %v431_v26 }
  0x20   :  { %399 = vmatprep.subr.bf16.mxu1 %v433_v1 }
  0x22   :  { %201 = vmatmul.mubr.bf16.vlgmr.msra.gmra.mrb[0].mxu0 %v328_v23 }
  0x23   :  { %400 = vmatpush3.bf16.msra.mxu1 %v432_v27 }
  0xf5   :  { %v370_v28 = vpop.f32.mrb[0].mxu0 }
  0xf6   :  { %v371_v30 = vpop.f32.mrb[1].mxu0 }
  0xf7   :  { %v372_v31 = vadd.f32 %v371_v30, %v370_v28  ;;  %v373_v32 = vpop.f32.mrb[2].mxu0 }
  0xf8   :  { %v374_v34 = vpop.f32.mrb[3].mxu0 }
  0xf9   :  { %v203_v35 = vadd.f32 %v372_v31, %v327_v29 }
  0xfb   :  { %vm208_vm1 = vcmp.gt.f32.partialorder %v203_v35, 0.0  ;;  %v210_v36 = vmul.f32 %v209_v33, %v203_v35 }
  0xfd   :  { %v211_v37 = vsel %vm208_vm1, %v203_v35, %v210_v36 }
  0xfe   :  { %212 = vst [vmem:[%s571_s5] sm:$0xff] %v211_v37  ;;  %v213_v38 = vpack.c.bf16 %v211_v37, %v211_v37 }
 0x100   :  { %402 = vmatmul.mubr.bf16.vlgmr.msra.gmra.mrb[0].mxu1 %v213_v38 }
 0x1d3   :  { %v312_v39 = vpop.f32.mrb[0].mxu1 }
 0x1d4   :  { %318 = vst [vmem:[%s572_s6] sm:$0xff] %v312_v39  ;;  %v403_v40 = vpop.f32.mrb[1].mxu1 }
 0x1d5   :  { %v315_v41 = vpop.f32.mrb[2].mxu1 }
 0x1d6   :  { %v404_v42 = vpop.f32.mrb[3].mxu1 }

</bundles_post_ra>
